<compile_context>
chip_gen: v5e
topology: v5e:2x2
jax: 0.10.0
libtpu: 0.0.40
codegen_flags: <defaults>
</compile_context>

<pallas_src>
import jax
import jax.numpy as jnp
from jax.experimental import pallas as pl
from jax.experimental.pallas import tpu as pltpu

# Older JAX releases expose the TPU compiler params under a different name.
_CompilerParams = getattr(pltpu, "CompilerParams", None) or getattr(pltpu, "TPUCompilerParams")

# Tile-size preferences (conservative: fit v5e/v6e/v7x default scoped VMEM with
# double-buffered bf16 inputs + one f32 accumulator).
#   v6e (128 MiB VMEM): _NODE_TILE can be raised to 512-1024 for large graphs
#                       (with pltpu.CompilerParams(vmem_limit_bytes=...)).
#   v7x (64 MiB VMEM):  keep <= 512; "parallel" grid axes shard tiles over its 2 TCs.
#   v5e:                128/256 tiles match the 4x(128x128) MXU.
_NODE_TILE = 256   # node rows of A_hat / X and the source-node reduction axis
_DIN_TILE = 256    # dim_in reduction axis of the feature transform
_DOUT_TILE = 128   # lane-dense output-feature axis


def _round_up(x: int, m: int) -> int:
    return ((x + m - 1) // m) * m


def _tile_and_pad(dim: int, pref: int):
    """Pick a (8,128)-aligned tile <= pref and the padded dim it divides."""
    t = min(pref, _round_up(dim, 128))
    return t, _round_up(dim, t)


# ---------------------------------------------------------------------------
# Kernel 1: plain tiled matmul   O = A @ B     (bf16 inputs, f32 accumulate)
# ---------------------------------------------------------------------------
def _matmul_kernel(a_ref, b_ref, o_ref, acc_ref):
    k = pl.program_id(2)

    @pl.when(k == 0)
    def _init():
        acc_ref[...] = jnp.zeros_like(acc_ref)

    acc_ref[...] += jnp.dot(a_ref[...], b_ref[...],
                            preferred_element_type=jnp.float32)

    @pl.when(k == pl.num_programs(2) - 1)
    def _finalize():
        o_ref[...] = acc_ref[...].astype(o_ref.dtype)


def _matmul(a, b, *, tm, tn, tk, out_dtype=jnp.float32):
    M, K = a.shape
    K2, N = b.shape
    assert K == K2 and M % tm == 0 and N % tn == 0 and K % tk == 0
    grid = (M // tm, N // tn, K // tk)
    return pl.pallas_call(
        _matmul_kernel,
        out_shape=jax.ShapeDtypeStruct((M, N), out_dtype),
        grid_spec=pltpu.PrefetchScalarGridSpec(
            num_scalar_prefetch=0,
            grid=grid,
            in_specs=[
                pl.BlockSpec((tm, tk), lambda i, j, k: (i, k)),
                pl.BlockSpec((tk, tn), lambda i, j, k: (k, j)),
            ],
            out_specs=pl.BlockSpec((tm, tn), lambda i, j, k: (i, j)),
            scratch_shapes=[pltpu.VMEM((tm, tn), jnp.float32)],
        ),
        compiler_params=_CompilerParams(
            dimension_semantics=("parallel", "parallel", "arbitrary")),
    )(a, b)


# ---------------------------------------------------------------------------
# Kernel 2: propagation hop   O = A_hat @ H + C (+ bias)   — fused f32 epilogue
# ---------------------------------------------------------------------------
def _prop_kernel(a_ref, h_ref, c_ref, bias_ref, o_ref, acc_ref):
    k = pl.program_id(2)

    @pl.when(k == 0)
    def _init():
        acc_ref[...] = jnp.zeros_like(acc_ref)

    acc_ref[...] += jnp.dot(a_ref[...], h_ref[...],
                            preferred_element_type=jnp.float32)

    @pl.when(k == pl.num_programs(2) - 1)
    def _finalize():
        o_ref[...] = (acc_ref[...] + c_ref[...] + bias_ref[...]).astype(o_ref.dtype)


def _propagate(a_hat, h, addend, bias_row, *, tm, tn, tk):
    M, K = a_hat.shape
    K2, N = h.shape
    assert K == K2 and addend.shape == (M, N) and bias_row.shape == (1, N)
    assert M % tm == 0 and N % tn == 0 and K % tk == 0
    grid = (M // tm, N // tn, K // tk)
    return pl.pallas_call(
        _prop_kernel,
        out_shape=jax.ShapeDtypeStruct((M, N), jnp.float32),
        grid_spec=pltpu.PrefetchScalarGridSpec(
            num_scalar_prefetch=0,
            grid=grid,
            in_specs=[
                pl.BlockSpec((tm, tk), lambda i, j, k: (i, k)),   # A_hat tile
                pl.BlockSpec((tk, tn), lambda i, j, k: (k, j)),   # H tile
                pl.BlockSpec((tm, tn), lambda i, j, k: (i, j)),   # addend Z_k (resident over k)
                pl.BlockSpec((1, tn), lambda i, j, k: (0, j)),    # bias row (resident over k)
            ],
            out_specs=pl.BlockSpec((tm, tn), lambda i, j, k: (i, j)),
            scratch_shapes=[pltpu.VMEM((tm, tn), jnp.float32)],
        ),
        compiler_params=_CompilerParams(
            dimension_semantics=("parallel", "parallel", "arbitrary")),
    )(a_hat, h, addend, bias_row)


# ---------------------------------------------------------------------------
# TAGConv forward (wrapper / glue)
# ---------------------------------------------------------------------------
def tagconv_forward(x, edge_index, edge_weight, weights, bias, *, K=3):
    """out = sum_{k=0..K} A_hat^k X W_k^T + bias   (PyG TAGConv semantics).

    x:           [N, dim_in] float32
    edge_index:  [2, E] int32   (row 0 = source, row 1 = destination)
    edge_weight: [E] float32 or None
    weights:     [K+1, dim_out, dim_in]  (PyG Linear weights; y = x @ W^T)
    bias:        [dim_out] float32
    """
    N, dim_in = x.shape
    dim_out = weights.shape[1]
    src = edge_index[0].astype(jnp.int32)
    dst = edge_index[1].astype(jnp.int32)
    if edge_weight is None:
        edge_weight = jnp.ones((edge_index.shape[1],), jnp.float32)
    edge_weight = edge_weight.astype(jnp.float32)

    # --- gcn_norm (add_self_loops=False), folded ONCE into the adjacency values ---
    deg = jax.ops.segment_sum(edge_weight, dst, num_segments=N)
    deg_inv_sqrt = jnp.where(deg > 0, jax.lax.rsqrt(jnp.maximum(deg, 1e-12)), 0.0)
    norm = deg_inv_sqrt[src] * edge_weight * deg_inv_sqrt[dst]

    # --- padding / tiling (lane dims -> multiples of 128, sublanes of 8) ---
    t_node, n_pad = _tile_and_pad(N, _NODE_TILE)        # node rows + source reduction axis
    t_din, din_pad = _tile_and_pad(dim_in, _DIN_TILE)   # transform reduction axis
    t_dop, dop_pad = _tile_and_pad(dim_out, _DOUT_TILE)  # lane-dense output features

    x_pad = jnp.zeros((n_pad, din_pad), jnp.float32).at[:N, :dim_in].set(x)
    # Dense normalized adjacency A_hat[dst, src]; duplicate edges accumulate (as in PyG).
    a_hat = jnp.zeros((n_pad, n_pad), jnp.float32).at[dst, src].add(norm)
    a_hat_bf16 = a_hat.astype(jnp.bfloat16)

    # W_cat[din_pad, (K+1)*dop_pad] with column-block k = W_k^T (zero padded)
    w_t = jnp.transpose(weights.astype(jnp.float32), (0, 2, 1))            # [K+1, din, dop]
    w_t = jnp.pad(w_t, ((0, 0), (0, din_pad - dim_in), (0, dop_pad - dim_out)))
    w_cat = jnp.transpose(w_t, (1, 0, 2)).reshape(din_pad, (K + 1) * dop_pad)

    bias_pad = jnp.zeros((1, dop_pad), jnp.float32).at[0, :dim_out].set(
        bias.astype(jnp.float32))
    zero_bias = jnp.zeros((1, dop_pad), jnp.float32)

    # --- 1) all K+1 feature transforms in ONE fused matmul: Z_cat = X @ W_cat ---
    z_cat = _matmul(x_pad.astype(jnp.bfloat16), w_cat.astype(jnp.bfloat16),
                    tm=t_node, tn=t_dop, tk=t_din)
    z = [z_cat[:, k * dop_pad:(k + 1) * dop_pad] for k in range(K + 1)]

    if K == 0:
        return (z[0] + bias_pad)[:N, :dim_out]

    # --- 2) K propagation hops, Horner order: h = Z_k + A_hat @ h (+ bias at k==0) ---
    h = z[K]
    for k in range(K - 1, -1, -1):
        h = _propagate(a_hat_bf16, h.astype(jnp.bfloat16), z[k],
                       bias_pad if k == 0 else zero_bias,
                       tm=t_node, tn=t_dop, tk=t_node)

    return h[:N, :dim_out]


# ---------------------------------------------------------------------------
# Pure-JAX (sparse, f32) reference for correctness checking
# ---------------------------------------------------------------------------
def tagconv_reference(x, edge_index, edge_weight, weights, bias, *, K=3):
    N = x.shape[0]
    src, dst = edge_index[0], edge_index[1]
    if edge_weight is None:
        edge_weight = jnp.ones((edge_index.shape[1],), jnp.float32)
    deg = jax.ops.segment_sum(edge_weight, dst, num_segments=N)
    deg_inv_sqrt = jnp.where(deg > 0, jax.lax.rsqrt(jnp.maximum(deg, 1e-12)), 0.0)
    norm = deg_inv_sqrt[src] * edge_weight * deg_inv_sqrt[dst]

    out = x @ weights[0].T
    h = x
    for k in range(1, K + 1):
        h = jax.ops.segment_sum(norm[:, None] * h[src], dst, num_segments=N)
        out = out + h @ weights[k].T
    return out + bias[None, :]


if __name__ == "__main__":
    key = jax.random.PRNGKey(0)
    N, E, dim_in, dim_out, K = 64, 256, 16, 32, 3
    k1, k2, k3, k4, k5 = jax.random.split(key, 5)

    x = jax.random.normal(k1, (N, dim_in), jnp.float32)
    edge_index = jax.random.randint(k2, (2, E), 0, N, dtype=jnp.int32)
    edge_weight = jax.random.uniform(k3, (E,), jnp.float32, minval=0.5, maxval=1.5)
    weights = jax.random.normal(k4, (K + 1, dim_out, dim_in), jnp.float32) / jnp.sqrt(dim_in)
    bias = jax.random.normal(k5, (dim_out,), jnp.float32) * 0.1

    out = jax.block_until_ready(
        tagconv_forward(x, edge_index, edge_weight, weights, bias, K=K))
    ref = jax.block_until_ready(
        tagconv_reference(x, edge_index, edge_weight, weights, bias, K=K))

    if not bool(jnp.allclose(out, ref, atol=5e-2, rtol=5e-2)):
        max_err = float(jnp.max(jnp.abs(out - ref)))
        raise AssertionError(f"TAGConv Pallas output mismatch, max abs err = {max_err}")

    print("KERNEL_OK")
</pallas_src>

<mosaic_0001>
module attributes {stable_mosaic.version = 11 : i64} {
  func.func @_matmul_kernel(%arg0: i32, %arg1: i32, %arg2: i32, %arg3: memref<128x128xbf16, #tpu.memory_space<vmem>>, %arg4: memref<128x128xbf16, #tpu.memory_space<vmem>>, %arg5: memref<128x128xf32, #tpu.memory_space<vmem>>, %arg6: memref<128x128xf32, #tpu.memory_space<vmem>>) attributes {dimension_semantics = [#tpu.dimension_semantics<parallel>, #tpu.dimension_semantics<parallel>, #tpu.dimension_semantics<arbitrary>], iteration_bounds = array<i64: 1, 4, 1>, scalar_prefetch = 0 : i64, scratch_operands = 1 : i64, tpu.core_type = #tpu.core_type<tc>, window_params = [{transform_indices = @transform_0, window_bounds = array<i64: 128, 128>}, {transform_indices = @transform_1, window_bounds = array<i64: 128, 128>}, {transform_indices = @transform_2, window_bounds = array<i64: 128, 128>}]} {
    %c0_i32 = arith.constant 0 : i32
    %0 = arith.cmpi eq, %arg2, %c0_i32 : i32
    %1 = arith.extui %0 : i1 to i32
    %c0_i32_0 = arith.constant 0 : i32
    %2 = arith.cmpi ne, %1, %c0_i32_0 : i32
    scf.if %2 {
      %cst_10 = arith.constant 0.000000e+00 : f32
      %12 = vector.broadcast %cst_10 : f32 to vector<128x128xf32>
      %c0_11 = arith.constant 0 : index
      %c0_12 = arith.constant 0 : index
      %13 = vector.load %arg6[%c0_11, %c0_12] : memref<128x128xf32, #tpu.memory_space<vmem>>, vector<128x128xf32>
      tpu.vector_store %arg6[%c0_11, %c0_12], %12 {strides = array<i32>} : memref<128x128xf32, #tpu.memory_space<vmem>>, vector<128x128xf32>,
    } else {
    }
    %c0 = arith.constant 0 : index
    %c0_1 = arith.constant 0 : index
    %3 = vector.load %arg6[%c0, %c0_1] : memref<128x128xf32, #tpu.memory_space<vmem>>, vector<128x128xf32>
    %c0_2 = arith.constant 0 : index
    %c0_3 = arith.constant 0 : index
    %4 = vector.load %arg3[%c0_2, %c0_3] : memref<128x128xbf16, #tpu.memory_space<vmem>>, vector<128x128xbf16>
    %c0_4 = arith.constant 0 : index
    %c0_5 = arith.constant 0 : index
    %5 = vector.load %arg4[%c0_4, %c0_5] : memref<128x128xbf16, #tpu.memory_space<vmem>>, vector<128x128xbf16>
    %cst = arith.constant dense<0.000000e+00> : vector<128x128xf32>
    %6 = tpu.matmul %4, %5, %cst {dimension_numbers = #tpu.dot_dimension_numbers<[1], [0], [0], [1], [0, 0, 1, 1], [], []>} : vector<128x128xbf16>, vector<128x128xbf16>, vector<128x128xf32> -> vector<128x128xf32>
    %7 = arith.addf %3, %6 : vector<128x128xf32>
    %c0_6 = arith.constant 0 : index
    %c0_7 = arith.constant 0 : index
    %8 = vector.load %arg6[%c0_6, %c0_7] : memref<128x128xf32, #tpu.memory_space<vmem>>, vector<128x128xf32>
    tpu.vector_store %arg6[%c0_6, %c0_7], %7 {strides = array<i32>} : memref<128x128xf32, #tpu.memory_space<vmem>>, vector<128x128xf32>,
    %c0_i32_8 = arith.constant 0 : i32
    %9 = arith.cmpi eq, %arg2, %c0_i32_8 : i32
    %10 = arith.extui %9 : i1 to i32
    %c0_i32_9 = arith.constant 0 : i32
    %11 = arith.cmpi ne, %10, %c0_i32_9 : i32
    scf.if %11 {
      %c0_10 = arith.constant 0 : index
      %c0_11 = arith.constant 0 : index
      %12 = vector.load %arg6[%c0_10, %c0_11] : memref<128x128xf32, #tpu.memory_space<vmem>>, vector<128x128xf32>
      %c0_12 = arith.constant 0 : index
      %c0_13 = arith.constant 0 : index
      %13 = vector.load %arg5[%c0_12, %c0_13] : memref<128x128xf32, #tpu.memory_space<vmem>>, vector<128x128xf32>
      tpu.vector_store %arg5[%c0_12, %c0_13], %12 {strides = array<i32>} : memref<128x128xf32, #tpu.memory_space<vmem>>, vector<128x128xf32>,
    } else {
    }
    return
  }
  func.func @transform_0(%arg0: i32, %arg1: i32, %arg2: i32) -> (i32, i32) {
    %c0_i32 = arith.constant 0 : i32
    return %arg0, %arg2 : i32, i32
  }
  func.func @transform_1(%arg0: i32, %arg1: i32, %arg2: i32) -> (i32, i32) {
    %c0_i32 = arith.constant 0 : i32
    return %arg2, %arg1 : i32, i32
  }
  func.func @transform_2(%arg0: i32, %arg1: i32, %arg2: i32) -> (i32, i32) {
    %c0_i32 = arith.constant 0 : i32
    return %arg0, %arg1 : i32, i32
  }
}

</mosaic_0001>

<bundles_post_ra>
// kernel: tpu_custom_call.1
= control target key start
LH: loop header
LB: loop body
LE: loop exit
PB: predicated region body
PF: predicated region fallthrough
CT: control target
= control target key end

     0   :  { %7 = vsyncpa [#allocation4], 0  ;;  %s1172_s0 = inlined_call_operand.hbm [shape: bf16[128,128], index: 0, kind: input, shape index: {}]   ;;  %s1173_s1 = inlined_call_operand.hbm [shape: bf16[128,512], index: 1, kind: input, shape index: {}]   ;;  %s1174_s2 = inlined_call_operand.hbm [shape: f32[128,512], index: 2, kind: output, shape index: {}]  }
   0x1   :  { %8 = vsyncpa [#allocation7], 0 }
   0x2   :  { %10 = vsyncpa [#allocation7 + $0x1], 0 }
   0x3   :  { %11 = vsyncpa [#allocation5], 0 }
   0x4   :  { %13 = vsyncpa [#allocation5 + $0x1], 0  ;;  %s990_s9 = smov 0   ;;  %s992_s10 = smov 0  }
   0x5   :  { %s994_s11 = smov 0   ;;  %s996_s12 = smov 0  }
   0x6   :  { %s998_s13 = smov 0   ;;  %s1000_s14 = smov 0  }
   0x7 LB: > { %s622_s15 = sadd.s32 4294967295, %s966_s14   ;;  %s623_s16 = sadd.s32 4294967294, %s966_s14   ;;  %s966_s14 = sphi %s1000_s14, %s19_s14   ;;  %s962_s13 = sphi %s998_s13, %s1188_s13   ;;  %s958_s12 = sphi %s996_s12, %s1187_s12   ;;  %s954_s11 = sphi %s994_s11, %s1186_s11   ;;  %s950_s10 = sphi %s992_s10, %s1185_s10   ;;  %s946_s9 = sphi %s990_s9, %s1184_s9  }
   0x8   : > { %p88_p0 = scmp.ne.s32.totalorder %s950_s10, %s946_s9  ;;  %p1024_p1 = scmp.eq.s32.totalorder %s622_s15, 0 }
   0x9   : > { %p1028_p2 = scmp.eq.s32.totalorder %s622_s15, 3  ;;  %p120_p3 = scmp.eq.s32.totalorder %s623_s16, 3 }
   0xa   : > { %p1034_p4 = por %p1024_p1, %p88_p0  ;;  %p624_p5 = scmp.ge.s32.totalorder %s966_s14, 1 }
   0xb   : > { %p1039_p6 = por %p120_p3, %p88_p0  ;;  %p127_p7 = scmp.lt.s32.totalorder %s966_s14, 5 }
   0xc   : > { %s142_s23 = sshll.u32 %s1172_s0, 4  ;;  %s968_s25 = smov [#allocation3]   ;;  %s143_s23 = int_to_ptr.hbm [resolvable:$true] %s142_s23 }
   0xd   : > { %p1047_p8 = pnand %p624_p5, %p127_p7  ;;  %s144_s26 = sshll.u32 %s968_s25, 4  ;;  %s145_s26 = int_to_ptr.vmem [resolvable:$true] %s144_s26 }
   0xe   : > { %s1175_s27 = smov 64   ;;  %s970_s28 = smov 4  }
   0xf   : > { %p749_p9 = pneg %p1047_p8  ;;  %s34_s29 = sadd.s32 1, %s962_s13 }
  0x10   : > { %p36_p11 = scmp.ge.s32.totalorder %s34_s29, 4  ;;  %s75_s30 = sadd.s32 1, %s954_s11 }
  0x11   : > { %p750_p10 = pnand %p749_p9, %p1024_p1  ;;  %p82_p12 = scmp.ne.s32.totalorder %s954_s11, %s950_s10 }
  0x12   : > { %p83_p13 = scmp.eq.s32.totalorder %s966_s14, 0  ;;  %s1190_s29 = smov (%p36_p11, %s34_s29), 0 }
  0x13   : > { %752 = dma.hbm_to_vmem [thread:$0]  (!%p750_p10), %s143_s23, 1024, %s145_s26, [#allocation4], %s1175_s27, %s1175_s27, %s970_s28  }
  0x14   : > { %p1065_p0 = por %p83_p13, %p82_p12  ;;  %p1071_p3 = por %p1028_p2, %p82_p12 }
  0x15   : > { %s71_s5 = ssub.s32 %s962_s13, %s1190_s29  ;;  %p762_p5 = scmp.lt.s32.totalorder %s966_s14, 4 }
  0x16   : > { %p73_p7 = scmp.eq.s32.totalorder %s71_s5, 0  ;;  %s158_s6 = sand.u32 1, %s954_s11  }
  0x17   : > { %s627_s7 = sshll.u32 %s158_s6, 6  ;;  %s628_s15 = sshll.u32 %s962_s13, 2 }
  0x18   : > { %s1080_s8 = scalar_select %p73_p7, %s954_s11, %s75_s30  }
  0x19   : > { %s169_s22 = scalar_lea.hbm %s1173_s1, %s628_s15  ;;  %s162_s23 = scalar_lea.vmem [#allocation6], %s627_s7 }
  0x1a   : > { %s172_s25 = sshll.u32 %s162_s23, 4  ;;  %s170_s18 = sshll.u32 %s169_s22, 4  ;;  %s173_s25 = int_to_ptr.vmem [resolvable:$true] %s172_s25  ;;  %s171_s18 = int_to_ptr.hbm [resolvable:$true] %s170_s18 }
  0x1b   : > { %p754_p2 = pnand %p762_p5, %p1065_p0  ;;  %s159_s26 = scalar_lea.sflag [#allocation7], %s158_s6 }
  0x1c   : > { %s971_s27 = smov 256   ;;  %s1183_s5 = smov 64  }
  0x1d   : > { %756 = dma.hbm_to_vmem [thread:$0]  (!%p754_p2), %s171_s18, 1024, %s173_s25, %s159_s26, %s971_s27, %s1183_s5, %s970_s28  }
  0x1e   : > { %184 = sbr.rel (%p1047_p8) target bundleno = 235 (0xeb), region = 28 }
  0x23   : > { %933 = dma.done.wait (%p1024_p1), [#allocation4], 1024  }
  0x24   : > { %935 = vsyncadd (%p1024_p1), [#allocation4], 4294966272  ;;  %s1097_s30 = sand.u32 1, %s950_s10  }
  0x25   : > { %s631_s3 = sshll.u32 %s1097_s30, 6  ;;  %s192_s6 = scalar_lea.sflag [#allocation7], %s1097_s30 }
  0x26   : > { %s1101_s7 = scalar_lea.vmem [#allocation6], %s631_s3 }
  0x27   : > { %937 = dma.done.wait (%p1034_p4), %s192_s6, 1024  }
  0x28   : > { %939 = vsyncadd (%p1034_p4), %s192_s6, 4294966272  ;;  %v716_v0 = vld [vmem:[%s1101_s7 + $0x38] sm:$0xff]  ;;  %v715_v1 = vld [vmem:[%s1101_s7 + $0x30] sm:$0xff]  ;;  %s632_s17 = sshll.u32 %s1097_s30, 7  ;;  %s698_s24 = sshll.u32 %s958_s12, 3 }
  0x29   : > { %384 = vmatpush.bf16.msra.mxu0 %v716_v0  ;;  %717 = vmatpush.bf16.msra.mxu1 %v716_v0  ;;  %v714_v2 = vld [vmem:[%s1101_s7 + $0x28] sm:$0xff]  ;;  %v713_v3 = vld [vmem:[%s1101_s7 + $0x20] sm:$0xff]  ;;  %v712_v4 = vld [vmem:[%s1101_s7 + $0x18] sm:$0xff]  ;;  %s1116_s19 = scalar_lea.vmem [#allocation8], %s632_s17  ;;  %s514_s15 = scalar_lea.hbm %s1174_s2, %s698_s24 }
  0x2a   : > { %718 = vmatpush.bf16.msra.mxu2 %v716_v0  ;;  %719 = vmatpush.bf16.msra.mxu3 %v716_v0  ;;  %v711_v5 = vld [vmem:[%s1101_s7 + $0x10] sm:$0xff]  ;;  %v710_v6 = vld [vmem:[%s1101_s7 + $0x8] sm:$0xff]  ;;  %v709_v7 = vld [vmem:[%s1101_s7] sm:$0xff]  ;;  %s515_s16 = sshll.u32 %s1116_s19, 4  ;;  %s517_s21 = sshll.u32 %s514_s15, 4  ;;  %s516_s16 = int_to_ptr.vmem [resolvable:$true] %s515_s16  ;;  %s518_s21 = int_to_ptr.hbm [resolvable:$true] %s517_s21 }
  0x2b   : > { %v701_v8 = vld [vmem:[#allocation3] sm:$0xff]  ;;  %v703_v9 = vld [vmem:[#allocation3 + $0x10] sm:$0xff]  ;;  %v702_v12 = vld [vmem:[#allocation3 + $0x8] sm:$0xff]  ;;  %s501_s12 = scalar_lea.sflag [#allocation5], %s1097_s30  ;;  %s894_s22 = sshra.s32 %s518_s21, 4  ;;  %s895_s22 = int_to_ptr.hbm [resolvable:$true] %s894_s22 }
  0x2c   : > { %v705_v10 = vld [vmem:[#allocation3 + $0x20] sm:$0xff]  ;;  %v707_v11 = vld [vmem:[#allocation3 + $0x30] sm:$0xff]  ;;  %v704_v13 = vld [vmem:[#allocation3 + $0x18] sm:$0xff]  ;;  %s896_s23 = scalar_lea.hbm %s895_s22, 128  ;;  %s900_s26 = scalar_lea.hbm %s1174_s2, 512 }
  0x2d   : > { %385 = vmatpush.bf16.msra.mxu0 %v715_v1  ;;  %720 = vmatpush.bf16.msra.mxu1 %v715_v1  ;;  %v706_v14 = vld [vmem:[#allocation3 + $0x28] sm:$0xff]  ;;  %v708_v15 = vld [vmem:[#allocation3 + $0x38] sm:$0xff]  ;;  %p897_p1 = scmp.ne.s32.totalorder %s895_s22, %s896_s23  ;;  %p901_p9 = scmp.lt.s32.totalorder %s895_s22, %s1174_s2 }
  0x2e   : > { %721 = vmatpush.bf16.msra.mxu2 %v715_v1  ;;  %722 = vmatpush.bf16.msra.mxu3 %v715_v1  ;;  %p902_p10 = scmp.lt.s32.totalorder %s900_s26, %s896_s23 }
  0x2f   : > { %p898_p4 = pnand %p897_p1, %p1071_p3 }
  0x30   : > { %p903_p11 = por %p902_p10, %p901_p9 }
  0x31   : > { %386 = vmatpush.bf16.msra.mxu0 %v714_v2  ;;  %723 = vmatpush.bf16.msra.mxu1 %v714_v2  ;;  %p899_p8 = pneg %p898_p4 }
  0x32   : > { %724 = vmatpush.bf16.msra.mxu2 %v714_v2  ;;  %725 = vmatpush.bf16.msra.mxu3 %v714_v2 }
  0x33   : > { %p904_p12 = pnand %p903_p11, %p899_p8 }
  0x35   : > { %387 = vmatpush.bf16.msra.mxu0 %v713_v3  ;;  %726 = vmatpush.bf16.msra.mxu1 %v713_v3 }
  0x36   : > { %727 = vmatpush.bf16.msra.mxu2 %v713_v3  ;;  %728 = vmatpush.bf16.msra.mxu3 %v713_v3 }
  0x39   : > { %388 = vmatpush.bf16.msra.mxu0 %v712_v4  ;;  %729 = vmatpush.bf16.msra.mxu1 %v712_v4 }
  0x3a   : > { %730 = vmatpush.bf16.msra.mxu2 %v712_v4  ;;  %731 = vmatpush.bf16.msra.mxu3 %v712_v4 }
  0x3d   : > { %389 = vmatpush.bf16.msra.mxu0 %v711_v5  ;;  %732 = vmatpush.bf16.msra.mxu1 %v711_v5 }
  0x3e   : > { %733 = vmatpush.bf16.msra.mxu2 %v711_v5  ;;  %734 = vmatpush.bf16.msra.mxu3 %v711_v5 }
  0x41   : > { %390 = vmatpush.bf16.msra.mxu0 %v710_v6  ;;  %735 = vmatpush.bf16.msra.mxu1 %v710_v6 }
  0x42   : > { %736 = vmatpush.bf16.msra.mxu2 %v710_v6  ;;  %737 = vmatpush.bf16.msra.mxu3 %v710_v6 }
  0x45   : > { %391 = vmatpush.bf16.msra.mxu0 %v709_v7  ;;  %738 = vmatpush.bf16.msra.mxu1 %v709_v7 }
  0x46   : > { %739 = vmatpush.bf16.msra.mxu2 %v709_v7  ;;  %740 = vmatpush.bf16.msra.mxu3 %v709_v7 }
  0x48   : > { %392 = vmatmul.bf16.vlgmr.msra.gmra.mxu0 %v701_v8  ;;  %402 = vmatmul.bf16.vlgmr.msra.gmra.mxu1 %v703_v9 }
  0x49   : > { %412 = vmatmul.bf16.vlgmr.msra.gmra.mxu2 %v705_v10  ;;  %422 = vmatmul.bf16.vlgmr.msra.gmra.mxu3 %v707_v11 }
  0x58   : > { %397 = vmatmul.bf16.gmra.mxu0 %v702_v12  ;;  %407 = vmatmul.bf16.gmra.mxu1 %v704_v13 }
  0x59   : > { %417 = vmatmul.bf16.gmra.mxu2 %v706_v14  ;;  %427 = vmatmul.bf16.gmra.mxu3 %v708_v15 }
  0xc5   : > { %v393_v16 = vpop.f32.mrf.mxu0  ;;  %v403_v17 = vpop.f32.mrf.mxu1 }
  0xc6   : > { %484 = vst [vmem:[%s1116_s19] sm:$0xff] %v393_v16 }
  0xc7   : > { %488 = vst [vmem:[%s1116_s19 + $0x20] sm:$0xff] %v403_v17 }
  0xcc   : > { %v413_v18 = vpop.f32.mrf.mxu2  ;;  %v423_v19 = vpop.f32.mrf.mxu3 }
  0xcd   : > { %492 = vst [vmem:[%s1116_s19 + $0x40] sm:$0xff] %v413_v18  ;;  %v395_v20 = vpop.f32.mrf.mxu0  ;;  %v405_v21 = vpop.f32.mrf.mxu1 }
  0xce   : > { %496 = vst [vmem:[%s1116_s19 + $0x60] sm:$0xff] %v423_v19 }
  0xcf   : > { %485 = vst [vmem:[%s1116_s19 + $0x8] sm:$0xff] %v395_v20 }
  0xd0   : > { %489 = vst [vmem:[%s1116_s19 + $0x28] sm:$0xff] %v405_v21 }
  0xd4   : > { %v415_v22 = vpop.f32.mrf.mxu2  ;;  %v425_v23 = vpop.f32.mrf.mxu3 }
  0xd5   : > { %493 = vst [vmem:[%s1116_s19 + $0x48] sm:$0xff] %v415_v22  ;;  %v398_v24 = vpop.f32.mrf.mxu0  ;;  %v408_v25 = vpop.f32.mrf.mxu1 }
  0xd6   : > { %497 = vst [vmem:[%s1116_s19 + $0x68] sm:$0xff] %v425_v23 }
  0xd7   : > { %486 = vst [vmem:[%s1116_s19 + $0x10] sm:$0xff] %v398_v24 }
  0xd8   : > { %490 = vst [vmem:[%s1116_s19 + $0x30] sm:$0xff] %v408_v25 }
  0xdc   : > { %v418_v26 = vpop.f32.mrf.mxu2  ;;  %v428_v27 = vpop.f32.mrf.mxu3 }
  0xdd   : > { %494 = vst [vmem:[%s1116_s19 + $0x50] sm:$0xff] %v418_v26  ;;  %v400_v28 = vpop.f32.mrf.mxu0  ;;  %v410_v29 = vpop.f32.mrf.mxu1 }
  0xde   : > { %498 = vst [vmem:[%s1116_s19 + $0x70] sm:$0xff] %v428_v27 }
  0xdf   : > { %487 = vst [vmem:[%s1116_s19 + $0x18] sm:$0xff] %v400_v28 }
  0xe0   : > { %491 = vst [vmem:[%s1116_s19 + $0x38] sm:$0xff] %v410_v29 }
  0xe4   : > { %v420_v30 = vpop.f32.mrf.mxu2  ;;  %v430_v31 = vpop.f32.mrf.mxu3 }
  0xe5   : > { %495 = vst [vmem:[%s1116_s19 + $0x58] sm:$0xff] %v420_v30 }
  0xe6   : > { %499 = vst [vmem:[%s1116_s19 + $0x78] sm:$0xff] %v430_v31 }
  0xe7   : > { %907 = shalt.err (!%p904_p12)
}
  0xe8   : > { %s972_s30 = smov 128   ;;  %s973_s6 = smov 512  }
  0xe9   : > { %s974_s7 = smov 8  }
  0xea   : > { %747 = dma.vmem_to_hbm [thread:$0]  (%p1071_p3), %s516_s16, 2048, %s518_s21, %s501_s12, %s972_s30, %s973_s6, %s974_s7  }
  0xeb PF: > { %p764_p13 = scmp.ge.s32.totalorder %s966_s14, 2  ;;  %s532_s17 = sand.u32 1, %s946_s9  }
  0xec   : > { %s533_s19 = scalar_lea.sflag [#allocation5], %s532_s17 }
  0xed   : > { %p758_p0 = pnand %p764_p13, %p1039_p6 }
  0xef   : > { %p759_p5 = pneg %p758_p0 }
  0xf1   : > { %941 = dma.done.wait (%p759_p5), %s533_s19, 2048  }
  0xf2   : > { %943 = vsyncadd (%p759_p5), %s533_s19, 4294965248  ;;  %s19_s14 = sadd.s32 1, %s966_s14   ;;  %s1184_s9 = smov %s950_s10 }
  0xf3   : > { %p16_p7 = scmp.ge.s32.totalorder %s19_s14, 6   ;;  %s1185_s10 = smov %s954_s11 }
  0xf4   : > { %s1186_s11 = smov %s1080_s8  ;;  %s1187_s12 = smov %s962_s13 }
  0xf5   : > { %s1188_s13 = smov %s1190_s29  ;;  %18 = sbr.rel (!%p16_p7) target bundleno = 7 (0x7), region = 87 }
  0xfa   :  { %539 = vsyncpa [#allocation4], 1 }
  0xfb   :  { %541 = vsyncpa [#allocation4 + $0x1], 1 }
  0xfc   :  { %542 = vsyncpa [#allocation7], 1 }
  0xfd   :  { %544 = vsyncpa [#allocation7 + $0x1], 1 }
  0xfe   :  { %545 = vsyncpa [#allocation5], 1 }
  0xff   :  { %547 = vsyncpa [#allocation5 + $0x1], 1 }

</bundles_post_ra>
